<compile_context>
chip_gen: v6e
topology: v6e:2x2x1
jax: 0.10.0
libtpu: 0.0.40
codegen_flags: <defaults>
</compile_context>

<pallas_src>
import math

import jax
import jax.numpy as jnp
from jax.experimental import pallas as pl
from jax.experimental.pallas import tpu as pltpu


def _make_mha_kernel(BS, D, H, hd):
    """All batches in one invocation; fused QKV; block-diagonal attention."""
    D3 = 3 * D

    def kernel(x_ref, wqkv_ref, wot_ref, slab_ref, out_ref):
        x = x_ref[...]                                    # (BS, D)
        slab = slab_ref[...]                              # (8k, 128m) f32 slab
        b_qkv = slab[0:1, 0:D3]                           # (1, 3D) fused QKV bias
        b_out = slab[1:2, 0:D]                            # (1, D)  out-proj bias
        bias = slab[2:2 + BS, 0:BS]                       # (BS, BS) additive mask

        # Fused Q|K|V projection over all B*S rows: one MXU matmul against the
        # pre-transposed, pre-scaled, stacked weight (scale folded into Q).
        qkv = jnp.dot(x, wqkv_ref[...],
                      preferred_element_type=jnp.float32) + b_qkv      # (BS, 3D) f32

        # Per-head views.  hd=4 on the lane axis (K=4 MXU contraction) is
        # lane-sparse but irrelevant at this toy size.
        # TODO(synk): at real sizes keep D (or S) on the lane axis, flash-tile
        # the key axis ("arbitrary" grid dim, running max/sum scratch) instead
        # of materializing (H, S, S) scores (v7x VMEM is only 64 MiB), and make
        # the out last dim a multiple of 128 for unmasked stores.
        q = qkv[:, 0:D].reshape(BS, H, hd)
        k = qkv[:, D:2 * D].reshape(BS, H, hd)
        v = qkv[:, 2 * D:D3].reshape(BS, H, hd)

        # Block-diagonal attention: the additive bias already contains both the
        # user key-mask (masked_fill(mask==0, -inf) expressed as finite -1e30)
        # and the -1e30 cross-batch mask, so one head-batched einsum covers all
        # batches at once.
        scores = jnp.einsum('qhd,khd->hqk', q, k,
                            preferred_element_type=jnp.float32)        # (H, BS, BS)
        scores = scores + bias[None, :, :]

        # TODO(synk): the torch module prints the pre-softmax scores; omitted.

        # Softmax over keys; reciprocal on the EUP + one Newton step (VPU) to
        # restore near-exact division.
        m = jnp.max(scores, axis=-1, keepdims=True)
        e = jnp.exp(scores - m)
        s = jnp.sum(e, axis=-1, keepdims=True)
        r = pl.reciprocal(s, approx=True)
        r = r * (2.0 - s * r)                              # Newton refinement
        attn = e * r

        # TODO(synk): attention_dropout omitted (deterministic eval-mode forward).

        ctx = jnp.einsum('hqk,khd->qhd', attn, v,
                         preferred_element_type=jnp.float32)            # (BS, H, hd)
        ctx2 = ctx.reshape(BS, D)

        # Output projection (weight pre-transposed in the wrapper).
        out = jnp.dot(ctx2.astype(wot_ref.dtype), wot_ref[...],
                      preferred_element_type=jnp.float32) + b_out
        out_ref[...] = out.astype(out_ref.dtype)

    return kernel


def multi_head_self_attention(x, params, key_mask, head_num, *,
                              use_bf16_mxu_inputs=False):
    """x: (B, S, D) f32; params: PyTorch-layout Linear params; key_mask: (B, S) int (0 == masked)."""
    B, S, D = x.shape
    BS = B * S
    hd = D // head_num
    scale = 1.0 / math.sqrt(hd)

    # ---- trace-time weight massaging (outside the kernel, done once) ----
    wq_s = params['wq'] * scale                            # fold 1/sqrt(head_dim) into Q
    bq_s = params['bq'] * scale
    w_qkv = jnp.concatenate([wq_s.T, params['wk'].T, params['wv'].T], axis=1)   # (D, 3D)
    b_qkv = jnp.concatenate([bq_s, params['bk'], params['bv']])                 # (3D,)
    wo_t = params['wo'].T                                                       # (D, D)
    bo = params['bo']                                                           # (D,)

    # Combined additive bias (BS, BS): user key-mask + block-diagonal
    # cross-batch mask so all batches run through one attention.  Finite -1e30
    # (not -inf) so a fully-masked row degrades to uniform attention instead of
    # NaN (documented divergence from torch masked_fill(-inf)).
    batch_ids = jnp.repeat(jnp.arange(B), S)                                    # (BS,)
    same_batch = batch_ids[:, None] == batch_ids[None, :]
    key_bias = jnp.where(key_mask.reshape(BS) == 0, -1e30, 0.0).astype(jnp.float32)
    bias = jnp.where(same_batch, key_bias[None, :],
                     jnp.float32(-1e30)).astype(jnp.float32)                    # (BS, BS)

    # Pack the three tiny operands into one padded f32 slab (fewer DMAs).
    slab_rows = -(-(2 + BS) // 8) * 8
    slab_cols = -(-max(3 * D, BS) // 128) * 128
    slab = jnp.zeros((slab_rows, slab_cols), jnp.float32)
    slab = slab.at[0, :3 * D].set(b_qkv)
    slab = slab.at[1, :D].set(bo)
    slab = slab.at[2:2 + BS, :BS].set(bias)

    x2 = x.reshape(BS, D)

    if use_bf16_mxu_inputs:
        # v6e/v7x: halve DMA bytes and feed the bf16 MXU natively.  Accumulation
        # stays f32 (preferred_element_type) and all softmax / mask math stays
        # f32, so no bf16 VPU/EUP work is introduced (v5e-safe).
        x2 = x2.astype(jnp.bfloat16)
        w_qkv = w_qkv.astype(jnp.bfloat16)
        wo_t = wo_t.astype(jnp.bfloat16)

    vmem = pl.BlockSpec(memory_space=pltpu.MemorySpace.VMEM)

    flops = (2 * BS * D * 3 * D                 # fused QKV projection
             + 4 * head_num * BS * BS * hd      # scores + context
             + 2 * BS * D * D)                  # output projection
    bytes_accessed = (x2.size * x2.dtype.itemsize
                      + w_qkv.size * w_qkv.dtype.itemsize
                      + wo_t.size * wo_t.dtype.itemsize
                      + slab.size * 4
                      + BS * D * x.dtype.itemsize)

    out2 = pl.pallas_call(
        _make_mha_kernel(BS, D, head_num, hd),
        out_shape=jax.ShapeDtypeStruct((BS, D), x.dtype),
        in_specs=[vmem, vmem, vmem, vmem],
        out_specs=vmem,
        cost_estimate=pl.CostEstimate(
            flops=flops,
            transcendentals=head_num * BS * BS,
            bytes_accessed=bytes_accessed),
    )(x2, w_qkv, wo_t, slab)

    # TODO(synk): for non-toy shapes, add a grid over B (or B*heads) marked
    # "parallel" via pltpu.CompilerParams(dimension_semantics=...) so v7x's two
    # TensorCores share the work, flash-tile the key axis, and set
    # vmem_limit_bytes against the per-chip scoped defaults (16/32/32 MiB on
    # v5e/v6e/v7x).  No-grid single invocation is best at B=3, S=2.
    return out2.reshape(B, S, D)


def _init_linear(key, in_features, out_features):
    """Deterministic PyTorch-style nn.Linear init: U(-1/sqrt(in), 1/sqrt(in))."""
    kw, kb = jax.random.split(key)
    bound = 1.0 / math.sqrt(in_features)
    w = jax.random.uniform(kw, (out_features, in_features), jnp.float32, -bound, bound)
    b = jax.random.uniform(kb, (out_features,), jnp.float32, -bound, bound)
    return w, b


def _reference(x, params, key_mask, head_num):
    """Pure-JAX mirror of the PyTorch forward (eval mode, no dropout)."""
    B, S, D = x.shape
    hd = D // head_num
    q = x @ params['wq'].T + params['bq']
    k = x @ params['wk'].T + params['bk']
    v = x @ params['wv'].T + params['bv']
    q = q.reshape(B, S, head_num, hd).transpose(0, 2, 1, 3)
    k = k.reshape(B, S, head_num, hd).transpose(0, 2, 1, 3)
    v = v.reshape(B, S, head_num, hd).transpose(0, 2, 1, 3)
    scores = jnp.einsum('bhqd,bhkd->bhqk', q, k) / math.sqrt(hd)
    mask = jnp.broadcast_to(key_mask[:, None, None, :], (B, head_num, S, S))
    scores = jnp.where(mask == 0, -jnp.inf, scores)
    attn = jax.nn.softmax(scores, axis=-1)
    ctx = jnp.einsum('bhqk,bhkd->bhqd', attn, v)
    ctx = ctx.transpose(0, 2, 1, 3).reshape(B, S, D)
    return ctx @ params['wo'].T + params['bo']


if __name__ == "__main__":
    # Shapes consistent with the module-level mask: batch=3, heads=8, seq=2;
    # hidden_dim=32 -> head_dim=4.
    B, S, D, H = 3, 2, 32, 8

    key = jax.random.PRNGKey(0)
    kx, kq, kk, kv, ko = jax.random.split(key, 5)

    x = jax.random.normal(kx, (B, S, D), jnp.float32)

    wq, bq = _init_linear(kq, D, D)
    wk, bk = _init_linear(kk, D, D)
    wv, bv = _init_linear(kv, D, D)
    wo, bo = _init_linear(ko, D, D)
    params = dict(wq=wq, bq=bq, wk=wk, bk=bk, wv=wv, bv=bv, wo=wo, bo=bo)

    # Per-batch key mask broadcast over heads/queries (no all-zero rows, so the
    # -inf softmax reference stays finite; masked_fill(mask==0, -inf) semantics
    # are preserved wherever at least one key is attended).
    key_mask = jnp.array([[1, 1], [0, 1], [1, 0]], dtype=jnp.int32)     # (B, S)

    out = multi_head_self_attention(x, params, key_mask, H)
    jax.block_until_ready(out)

    ref = _reference(x, params, key_mask, H)
    # Tolerance tightened to 1e-3 (Newton-refined reciprocal); remaining delta
    # is f32 rounding from the folded scale / different accumulation order.
    assert jnp.allclose(out, ref, atol=1e-3, rtol=1e-3), "Pallas output mismatch vs reference"

    print("KERNEL_OK")
</pallas_src>

<mosaic_0001>
module attributes {stable_mosaic.version = 11 : i64} {
  func.func @kernel(%arg0: memref<6x32xf32, #tpu.memory_space<vmem>>, %arg1: memref<32x96xf32, #tpu.memory_space<vmem>>, %arg2: memref<32x32xf32, #tpu.memory_space<vmem>>, %arg3: memref<8x128xf32, #tpu.memory_space<vmem>>, %arg4: memref<6x32xf32, #tpu.memory_space<vmem>>) attributes {dimension_semantics = [], scalar_prefetch = 0 : i64, scratch_operands = 0 : i64, tpu.core_type = #tpu.core_type<tc>} {
    %c0 = arith.constant 0 : index
    %c0_0 = arith.constant 0 : index
    %0 = vector.load %arg0[%c0, %c0_0] : memref<6x32xf32, #tpu.memory_space<vmem>>, vector<6x32xf32>
    %c0_1 = arith.constant 0 : index
    %c0_2 = arith.constant 0 : index
    %1 = vector.load %arg3[%c0_1, %c0_2] : memref<8x128xf32, #tpu.memory_space<vmem>>, vector<8x128xf32>
    %2 = vector.extract_strided_slice %1 {offsets = [0, 0], sizes = [1, 96], strides = [1, 1]} : vector<8x128xf32> to vector<1x96xf32>
    %3 = vector.extract_strided_slice %1 {offsets = [1, 0], sizes = [1, 32], strides = [1, 1]} : vector<8x128xf32> to vector<1x32xf32>
    %4 = vector.extract_strided_slice %1 {offsets = [2, 0], sizes = [6, 6], strides = [1, 1]} : vector<8x128xf32> to vector<6x6xf32>
    %c0_3 = arith.constant 0 : index
    %c0_4 = arith.constant 0 : index
    %5 = vector.load %arg1[%c0_3, %c0_4] : memref<32x96xf32, #tpu.memory_space<vmem>>, vector<32x96xf32>
    %cst = arith.constant dense<0.000000e+00> : vector<6x96xf32>
    %6 = tpu.matmul %0, %5, %cst {dimension_numbers = #tpu.dot_dimension_numbers<[1], [0], [0], [1], [0, 0, 1, 1], [], []>} : vector<6x32xf32>, vector<32x96xf32>, vector<6x96xf32> -> vector<6x96xf32>
    %7 = vector.broadcast %2 : vector<1x96xf32> to vector<6x96xf32>
    %8 = arith.addf %6, %7 : vector<6x96xf32>
    %9 = vector.extract_strided_slice %8 {offsets = [0, 0], sizes = [6, 32], strides = [1, 1]} : vector<6x96xf32> to vector<6x32xf32>
    %10 = vector.shape_cast %9 : vector<6x32xf32> to vector<6x8x4xf32>
    %11 = vector.extract_strided_slice %8 {offsets = [0, 32], sizes = [6, 32], strides = [1, 1]} : vector<6x96xf32> to vector<6x32xf32>
    %12 = vector.shape_cast %11 : vector<6x32xf32> to vector<6x8x4xf32>
    %13 = vector.extract_strided_slice %8 {offsets = [0, 64], sizes = [6, 32], strides = [1, 1]} : vector<6x96xf32> to vector<6x32xf32>
    %14 = vector.shape_cast %13 : vector<6x32xf32> to vector<6x8x4xf32>
    "tpu.trace_start"() <{level = 10 : i32, message = "qhd,khd->hqk"}> : () -> ()
    %cst_5 = arith.constant dense<0.000000e+00> : vector<8x6x6xf32>
    %15 = tpu.matmul %10, %12, %cst_5 {dimension_numbers = #tpu.dot_dimension_numbers<[2], [2], [0], [0], [0, 1, 0, 0, 1, 0], [1], [1]>} : vector<6x8x4xf32>, vector<6x8x4xf32>, vector<8x6x6xf32> -> vector<8x6x6xf32>
    "tpu.trace_stop"() : () -> ()
    %16 = vector.shape_cast %4 : vector<6x6xf32> to vector<1x6x6xf32>
    %17 = vector.broadcast %16 : vector<1x6x6xf32> to vector<8x6x6xf32>
    %18 = arith.addf %15, %17 : vector<8x6x6xf32>
    %cst_6 = arith.constant dense<0xFF800000> : vector<8x6xf32>
    %19 = vector.multi_reduction <maximumf>, %18, %cst_6 [2] : vector<8x6x6xf32> to vector<8x6xf32>
    %20 = vector.shape_cast %19 : vector<8x6xf32> to vector<8x6x1xf32>
    %21 = vector.broadcast %20 : vector<8x6x1xf32> to vector<8x6x6xf32>
    %22 = arith.subf %18, %21 : vector<8x6x6xf32>
    %23 = math.exp %22 : vector<8x6x6xf32>
    %cst_7 = arith.constant dense<0.000000e+00> : vector<8x6xf32>
    %24 = vector.multi_reduction <add>, %23, %cst_7 [2] : vector<8x6x6xf32> to vector<8x6xf32>
    %25 = vector.shape_cast %24 : vector<8x6xf32> to vector<8x6x1xf32>
    %26 = tpu.reciprocal %25 {approx = true} : vector<8x6x1xf32> -> vector<8x6x1xf32>
    %27 = arith.mulf %25, %26 : vector<8x6x1xf32>
    %cst_8 = arith.constant 2.000000e+00 : f32
    %28 = vector.broadcast %cst_8 : f32 to vector<8x6x1xf32>
    %29 = arith.subf %28, %27 : vector<8x6x1xf32>
    %30 = arith.mulf %26, %29 : vector<8x6x1xf32>
    %31 = vector.broadcast %30 : vector<8x6x1xf32> to vector<8x6x6xf32>
    %32 = arith.mulf %23, %31 : vector<8x6x6xf32>
    "tpu.trace_start"() <{level = 10 : i32, message = "hqk,khd->qhd"}> : () -> ()
    %cst_9 = arith.constant dense<0.000000e+00> : vector<8x4x6xf32>
    %33 = tpu.matmul %14, %32, %cst_9 {dimension_numbers = #tpu.dot_dimension_numbers<[0], [2], [2], [1], [0, 1, 0, 2, 1, 1], [1], [0]>} : vector<6x8x4xf32>, vector<8x6x6xf32>, vector<8x4x6xf32> -> vector<8x4x6xf32>
    %34 = tpu.transpose %33, [2, 0, 1] : vector<8x4x6xf32> -> vector<6x8x4xf32>
    "tpu.trace_stop"() : () -> ()
    %35 = vector.shape_cast %34 : vector<6x8x4xf32> to vector<6x32xf32>
    %c0_10 = arith.constant 0 : index
    %c0_11 = arith.constant 0 : index
    %36 = vector.load %arg2[%c0_10, %c0_11] : memref<32x32xf32, #tpu.memory_space<vmem>>, vector<32x32xf32>
    %cst_12 = arith.constant dense<0.000000e+00> : vector<6x32xf32>
    %37 = tpu.matmul %35, %36, %cst_12 {dimension_numbers = #tpu.dot_dimension_numbers<[1], [0], [0], [1], [0, 0, 1, 1], [], []>} : vector<6x32xf32>, vector<32x32xf32>, vector<6x32xf32> -> vector<6x32xf32>
    %38 = vector.broadcast %3 : vector<1x32xf32> to vector<6x32xf32>
    %39 = arith.addf %37, %38 : vector<6x32xf32>
    %c0_13 = arith.constant 0 : index
    %c0_14 = arith.constant 0 : index
    %40 = vector.load %arg4[%c0_13, %c0_14] : memref<6x32xf32, #tpu.memory_space<vmem>>, vector<6x32xf32>
    tpu.vector_store %arg4[%c0_13, %c0_14], %39 {strides = array<i32>} : memref<6x32xf32, #tpu.memory_space<vmem>>, vector<6x32xf32>,
    return
  }
}

</mosaic_0001>

<bundles_post_ra>
// kernel: tpu_custom_call.1
= control target key start
LH: loop header
LB: loop body
LE: loop exit
PB: predicated region body
PF: predicated region fallthrough
CT: control target
= control target key end

     0   :  { %9 = vsyncpa [#allocation3], 0  ;;  %s3349_s0 = inlined_call_operand.hbm [shape: f32[6,32], index: 0, kind: input, shape index: {}]   ;;  %s3350_s1 = inlined_call_operand.hbm [shape: f32[32,96], index: 1, kind: input, shape index: {}]   ;;  %s3351_s2 = inlined_call_operand.hbm [shape: f32[32,32], index: 2, kind: input, shape index: {}]   ;;  %s3352_s3 = inlined_call_operand.hbm [shape: f32[8,128], index: 3, kind: input, shape index: {}]   ;;  %s3353_s4 = inlined_call_operand.hbm [shape: f32[6,32], index: 4, kind: output, shape index: {}]  }
   0x1   :  { %10 = vsyncpa [#allocation6], 0 }
   0x2   :  { %11 = vsyncpa [#allocation9], 0 }
   0x3   :  { %12 = vsyncpa [#allocation4], 0  ;;  %s3053_s15 = smov [#allocation5]  }
   0x4   :  { %s28_s16 = sshll.u32 %s3053_s15, 4  ;;  %s29_s16 = int_to_ptr.vmem [resolvable:$true] %s28_s16 }
   0x5   :  { %s2953_s17 = scalar_lea.vmem %s29_s16, 512  ;;  %p2958_p1 = scmp.lt.s32.totalorder %s29_s16, %s29_s16 }
   0x6   :  { %p2954_p0 = scmp.ne.s32.totalorder %s29_s16, %s2953_s17  ;;  %p2959_p2 = scmp.lt.s32.totalorder %s2953_s17, %s2953_s17 }
   0x8   :  { %p2960_p3 = por %p2959_p2, %p2958_p1 }
   0xa   :  { %p2961_p4 = pnand %p2960_p3, %p2954_p0 }
   0xc   :  { %2964 = shalt.err (!%p2961_p4)
}
   0xd   :  { %s3054_s18 = smov 128   ;;  %s3055_s19 = smov 8  }
   0xe   :  { %34 = dma.hbm_to_vmem [thread:$0]  %s3350_s1, 512, %s29_s16, [#allocation6], %s3054_s18, %s3054_s18, %s3055_s19  }
   0xf   :  { %s3056_s22 = smov [#allocation2]   ;;  %s3057_s24 = smov [#allocation7]  }
  0x10   :  { %s19_s23 = sshll.u32 %s3056_s22, 4  ;;  %s40_s25 = sshll.u32 %s3057_s24, 4  ;;  %s20_s23 = int_to_ptr.vmem [resolvable:$true] %s19_s23  ;;  %s41_s25 = int_to_ptr.vmem [resolvable:$true] %s40_s25 }
  0x11   :  { %s2973_s26 = scalar_lea.vmem %s20_s23, 128  ;;  %p2978_p6 = scmp.lt.s32.totalorder %s20_s23, %s20_s23 }
  0x12   :  { %p2974_p5 = scmp.ne.s32.totalorder %s20_s23, %s2973_s26  ;;  %p2979_p7 = scmp.lt.s32.totalorder %s2973_s26, %s2973_s26 }
  0x14   :  { %p2980_p8 = por %p2979_p7, %p2978_p6 }
  0x16   :  { %p2981_p9 = pnand %p2980_p8, %p2974_p5 }
  0x18   :  { %2984 = shalt.err (!%p2981_p9)
}
  0x19   :  { %22 = dma.hbm_to_vmem [thread:$0]  %s3349_s0, 128, %s20_s23, [#allocation3]  }
  0x1a   :  { %s2993_s29 = scalar_lea.vmem %s41_s25, 512  ;;  %p2998_p11 = scmp.lt.s32.totalorder %s41_s25, %s41_s25 }
  0x1b   :  { %p2994_p10 = scmp.ne.s32.totalorder %s41_s25, %s2993_s29  ;;  %p2999_p12 = scmp.lt.s32.totalorder %s2993_s29, %s2993_s29 }
  0x1d   :  { %p3000_p13 = por %p2999_p12, %p2998_p11 }
  0x1f   :  { %p3001_p0 = pnand %p3000_p13, %p2994_p10 }
  0x21   :  { %3004 = shalt.err (!%p3001_p0)
}
  0x22   :  { %46 = dma.hbm_to_vmem [thread:$0]  %s3351_s2, 512, %s41_s25, [#allocation6], %s3054_s18, %s3054_s18, %s3055_s19  }
  0x23   :  { %s3058_s5 = smov [#allocation8]  }
  0x24   :  { %s53_s6 = sshll.u32 %s3058_s5, 4  ;;  %s54_s6 = int_to_ptr.vmem [resolvable:$true] %s53_s6 }
  0x25   :  { %s3013_s7 = scalar_lea.vmem %s54_s6, 128  ;;  %p3018_p2 = scmp.lt.s32.totalorder %s54_s6, %s54_s6 }
  0x26   :  { %p3014_p1 = scmp.ne.s32.totalorder %s54_s6, %s3013_s7  ;;  %p3019_p3 = scmp.lt.s32.totalorder %s3013_s7, %s3013_s7 }
  0x28   :  { %p3020_p4 = por %p3019_p3, %p3018_p2 }
  0x2a   :  { %p3021_p5 = pnand %p3020_p4, %p3014_p1 }
  0x2c   :  { %3024 = shalt.err (!%p3021_p5)
}
  0x2d   :  { %56 = dma.hbm_to_vmem [thread:$0]  %s3352_s3, 128, %s54_s6, [#allocation9]  }
  0x2e   :  { %3045 = dma.done.wait [#allocation3], 128  }
  0x2f   :  { %3046 = vsyncadd [#allocation3], 4294967168 }
  0x30   :  { %3047 = dma.done.wait [#allocation6], 1024  }
  0x31   :  { %3048 = vsyncadd [#allocation6], 4294966272 }
  0x32   :  { %3049 = dma.done.wait [#allocation9], 128  }
  0x33   :  { %3050 = vsyncadd [#allocation9], 4294967168  ;;  %v3059_v0 = vmov 0.0   ;;  %vm3060_vm0 = vmmov 0   ;;  %v74_v1 = vld [vmem:[#allocation5 + $0x18] sm:$0xff]  ;;  %v73_v2 = vld [vmem:[#allocation5 + $0x10] sm:$0xff]  ;;  %v75_v6 = vlaneseq }
  0x34   :  { %2785 = vmatprep.subr.mxu0 %v3059_v0  ;;  %2793 = vmatprep.mubr.msk.f32.mxu0 %vm3060_vm0, %v3059_v0  ;;  %v72_v3 = vld [vmem:[#allocation5 + $0x8] sm:$0xff]  ;;  %v71_v4 = vld [vmem:[#allocation5] sm:$0xff]  ;;  %v69_v5 = vld [vmem:[#allocation2] sm:$0x3f]  ;;  %vm79_vm1 = vcmask 261120   ;;  %s3061_s2 = smov 116  }
  0x35   :  { %2801 = vmatprep.subr.mxu1 %v3059_v0  ;;  %2803 = vmatprep.mubr.msk.f32.mxu1 %vm3060_vm0, %v3059_v0  ;;  %v3131_v7 = vshrl.u32 %v75_v6, 7  ;;  %v3134_v9 = vld [vmem:[#allocation8] sm:$0xff]  ;;  %s3062_s3 = smov 124   ;;  %s3063_s9 = smov 112   ;;  %vm454_vm2 = vcmask 1043456   ;;  %vm451_vm3 = vcmask 31744  }
  0x36   :  { %2786 = vmatpush3.msra.mxu0 %v74_v1  ;;  %s3064_s10 = smov 120   ;;  %s3065_s11 = smov 104   ;;  %v449_v37 = vrot.slane %v3134_v9, 2  ;;  %vm1053_vm4 = vcmask 46080   ;;  %vm1446_vm5 = vcmask 48128   ;;  %vm2592_vm6 = vcmask 64512  }
  0x37   :  { %2787 = vmatprep.subr.mxu0 %v3059_v0  ;;  %v77_v8 = vsub.s32 0, %v3131_v7  ;;  %s3066_s12 = smov 108   ;;  %s3067_s13 = smov 96   ;;  %vm2594_vm7 = vcmask 97280   ;;  %vm2596_vm8 = vcmask 130048   ;;  %vm2598_vm9 = vcmask 162816  }
  0x38   :  { %2788 = vmatpush3.msra.mxu0 %v73_v2  ;;  %s3068_s14 = smov 100   ;;  %s3069_s15 = smov 64   ;;  %vm2600_vm10 = vcmask 195584   ;;  %vm2602_vm11 = vcmask 228352   ;;  %vm2685_vm12 = vcmask 259072  }
  0x39   :  { %2789 = vmatprep.subr.mxu0 %v3059_v0  ;;  %v78_v10 = vrot.slane %v3134_v9, %v77_v8  ;;  %s3072_s16 = smov 4   ;;  %s3073_s17 = smov 12  }
  0x3a   :  { %2790 = vmatpush3.msra.mxu0 %v72_v3  ;;  %s3074_s18 = smov 24   ;;  %s3076_s20 = smov 20  }
  0x3b   :  { %2791 = vmatprep.subr.mxu0 %v3059_v0  ;;  %s3077_s21 = smov 28   ;;  %s3078_s22 = smov [#allocation10]  }
  0x3c   :  { %2792 = vmatpush3.msra.mxu0 %v71_v4  ;;  %s2693_s23 = sshll.u32 %s3078_s22, 4  ;;  %s2694_s23 = int_to_ptr.vmem [resolvable:$true] %s2693_s23 }
  0x3d   :  { %2794 = vmatmul.mubr.msk.f32.vlgmr.msra.gmra.mxu0 %vm79_vm1, %v69_v5  ;;  %2796 = vmatprep.subr.mxu0 %v3059_v0  ;;  %s3025_s24 = scalar_lea.vmem %s2694_s23, 128  ;;  %p3030_p7 = scmp.lt.s32.totalorder %s2694_s23, %s2694_s23 }
  0x3e   :  { %2798 = vmatprep.mubr.msk.f32.mxu0 %vm3060_vm0, %v3059_v0  ;;  %p3026_p6 = scmp.ne.s32.totalorder %s2694_s23, %s3025_s24  ;;  %p3031_p8 = scmp.lt.s32.totalorder %s3025_s24, %s3025_s24 }
  0x40   :  { %p3032_p9 = por %p3031_p8, %p3030_p7 }
  0x42   :  { %p3033_p10 = pnand %p3032_p9, %p3026_p6 }
  0xfd   :  { %v149_v11 = vpop.f32.mrf.mxu0 }
  0xfe   :  { %v3137_v12 = vadd.f32 %v149_v11, %v78_v10 }
  0xff   :  { %v2795_v13 = vpop.f32.mrf.mxu0 }
 0x100   :  { %158 = vrot.lane.b32.xlu1 %v3137_v12, %s3061_s2  ;;  %154 = vrot.lane.b32.xlu0 %v3137_v12, %s3062_s3 }
 0x104   :  { %160 = vrot.lane.b32.xlu1 %v3137_v12, %s3063_s9  ;;  %156 = vrot.lane.b32.xlu0 %v3137_v12, %s3064_s10 }
 0x108   :  { %164 = vrot.lane.b32.xlu1 %v3137_v12, %s3065_s11  ;;  %162 = vrot.lane.b32.xlu0 %v3137_v12, %s3066_s12 }
 0x10c   :  { %168 = vrot.lane.b32.xlu1 %v3137_v12, %s3067_s13  ;;  %166 = vrot.lane.b32.xlu0 %v3137_v12, %s3068_s14 }
 0x172   :  { %v3147_v14 = vpop.permute.xlu1 %158  ;;  %v3149_v15 = vpop.permute.xlu0 %154 }
 0x173   :  { %170 = vrot.lane.b32.xlu0 %v3149_v15, %s3067_s13 }
 0x176   :  { %v3152_v16 = vpop.permute.xlu0 %156  ;;  %v3156_v17 = vpop.permute.xlu1 %160 }
 0x177   :  { %174 = vrot.lane.b32.xlu0 %v3147_v14, %s3067_s13  ;;  %172 = vrot.lane.b32.xlu1 %v3152_v16, %s3067_s13 }
 0x17a   :  { %v3158_v18 = vpop.permute.xlu0 %162  ;;  %v3162_v19 = vpop.permute.xlu1 %164 }
 0x17b   :  { %176 = vrot.lane.b32.xlu1 %v3156_v17, %s3067_s13  ;;  %178 = vrot.lane.b32.xlu0 %v3158_v18, %s3067_s13 }
 0x17e   :  { %v3164_v20 = vpop.permute.xlu0 %166  ;;  %v169_v21 = vpop.permute.xlu1 %168 }
 0x17f   :  { %180 = vrot.lane.b32.xlu1 %v3162_v19, %s3067_s13  ;;  %182 = vrot.lane.b32.xlu0 %v3164_v20, %s3067_s13 }
 0x1a8   :  { %192 = vxpose.xlu1.b32.start.end [1/1] (short) (narrow) %v169_v21, 8 }
 0x1e5   :  { %v171_v22 = vpop.permute.xlu0 %170 }
 0x1e6   :  { %224 = vxpose.xlu0.b32.start.end [1/1] (short) (narrow) %v171_v22, 8 }
 0x1e9   :  { %v173_v23 = vpop.permute.xlu1 %172  ;;  %v175_v24 = vpop.permute.xlu0 %174 }
 0x1ea   :  { %256 = vxpose.xlu0.b32.start.end [1/1] (short) (narrow) %v173_v23, 8 }
 0x1ed   :  { %v177_v25 = vpop.permute.xlu1 %176  ;;  %v179_v26 = vpop.permute.xlu0 %178 }
 0x1ee   :  { %320 = vxpose.xlu1.b32.start.end [1/1] (short) (narrow) %v177_v25, 8  ;;  %288 = vxpose.xlu0.b32.start.end [1/1] (short) (narrow) %v175_v24, 8 }
 0x1f1   :  { %v181_v27 = vpop.permute.xlu1 %180  ;;  %v183_v28 = vpop.permute.xlu0 %182 }
 0x1f2   :  { %384 = vxpose.xlu1.b32.start.end [1/1] (short) (narrow) %v181_v27, 8  ;;  %352 = vxpose.xlu0.b32.start.end [1/1] (short) (narrow) %v179_v26, 8 }
 0x1f6   :  { %416 = vxpose.xlu0.b32.start.end [1/1] (short) (narrow) %v183_v28, 8 }
 0x224   :  { %v208_v29 = vpop.trf.xlu1 }
 0x225   :  { %2797 = vmatpush3.msk.msra.mxu0 %vm454_vm2, %v208_v29 }
 0x226   :  { %2799 = vmatmul.mubr.msk.f32.vlgmr.msra.gmra.mxu0 %vm451_vm3, %v3137_v12  ;;  %2811 = vmatprep.subr.mxu0 %v3059_v0 }
 0x227   :  { %2813 = vmatprep.mubr.msk.f32.mxu0 %vm3060_vm0, %v3059_v0 }
 0x262   :  { %v240_v30 = vpop.trf.xlu0 }
 0x263   :  { %2802 = vmatpush3.msk.msra.mxu1 %vm454_vm2, %v240_v30 }
 0x264   :  { %2804 = vmatmul.mubr.msk.f32.vlgmr.msra.gmra.mxu1 %vm451_vm3, %v3149_v15  ;;  %2806 = vmatprep.subr.mxu1 %v3059_v0 }
 0x265   :  { %2808 = vmatprep.mubr.msk.f32.mxu1 %vm3060_vm0, %v3059_v0 }
 0x266   :  { %v272_v31 = vpop.trf.xlu0 }
 0x267   :  { %2807 = vmatpush3.msk.msra.mxu1 %vm454_vm2, %v272_v31 }
 0x268   :  { %2809 = vmatmul.mubr.msk.f32.vlgmr.msra.gmra.mxu1 %vm451_vm3, %v3152_v16  ;;  %2816 = vmatprep.subr.mxu1 %v3059_v0 }
 0x269   :  { %2818 = vmatprep.mubr.msk.f32.mxu1 %vm3060_vm0, %v3059_v0 }
 0x26a   :  { %v336_v32 = vpop.trf.xlu1  ;;  %v304_v33 = vpop.trf.xlu0 }
 0x26b   :  { %2812 = vmatpush3.msk.msra.mxu0 %vm454_vm2, %v304_v33  ;;  %2817 = vmatpush3.msk.msra.mxu1 %vm454_vm2, %v336_v32 }
 0x26c   :  { %2814 = vmatmul.mubr.msk.f32.vlgmr.msra.gmra.mxu0 %vm451_vm3, %v3147_v14  ;;  %2819 = vmatmul.mubr.msk.f32.vlgmr.msra.gmra.mxu1 %vm451_vm3, %v3156_v17 }
 0x26d   :  { %2821 = vmatprep.subr.mxu0 %v3059_v0  ;;  %2826 = vmatprep.subr.mxu1 %v3059_v0 }
 0x26e   :  { %v400_v34 = vpop.trf.xlu1  ;;  %v368_v35 = vpop.trf.xlu0  ;;  %2823 = vmatprep.mubr.msk.f32.mxu0 %vm3060_vm0, %v3059_v0  ;;  %2828 = vmatprep.mubr.msk.f32.mxu1 %vm3060_vm0, %v3059_v0 }
 0x26f   :  { %2822 = vmatpush3.msk.msra.mxu0 %vm454_vm2, %v368_v35  ;;  %2827 = vmatpush3.msk.msra.mxu1 %vm454_vm2, %v400_v34 }
 0x270   :  { %2824 = vmatmul.mubr.msk.f32.vlgmr.msra.gmra.mxu0 %vm451_vm3, %v3158_v18  ;;  %2829 = vmatmul.mubr.msk.f32.vlgmr.msra.gmra.mxu1 %vm451_vm3, %v3162_v19 }
 0x271   :  { %2831 = vmatprep.subr.mxu0 %v3059_v0  ;;  %2833 = vmatprep.mubr.msk.f32.mxu0 %vm3060_vm0, %v3059_v0 }
 0x272   :  { %v432_v36 = vpop.trf.xlu0  ;;  %2836 = vmatprep.subr.mxu1 %v3059_v0  ;;  %2838 = vmatprep.mubr.msk.f32.mxu1 %vm3060_vm0, %v3059_v0 }
 0x273   :  { %2832 = vmatpush3.msk.msra.mxu0 %vm454_vm2, %v432_v36 }
 0x274   :  { %2834 = vmatmul.mubr.msk.f32.vlgmr.msra.gmra.mxu0 %vm451_vm3, %v3164_v20  ;;  %2841 = vmatprep.subr.mxu0 %v3059_v0 }
 0x275   :  { %2843 = vmatprep.mubr.msk.f32.mxu0 %vm3060_vm0, %v3059_v0 }
 0x2e6   :  { %v524_v38 = vpop.f32.mrf.mxu0 }
 0x2e7   :  { %v525_v39 = vadd.f32 %v524_v38, %v449_v37 }
 0x2e8   :  { %v2800_v40 = vpop.f32.mrf.mxu0 }
 0x2e9   :  { %v1054_v41 = vsel %vm1053_vm4, %v525_v39, -inf }
 0x2ea   :  { %1055 = vmax.xlane.f32.xlu1 %v1054_v41 }
 0x324   :  { %v599_v42 = vpop.f32.mrf.mxu1 }
 0x325   :  { %v600_v43 = vadd.f32 %v599_v42, %v449_v37 }
 0x326   :  { %v2805_v44 = vpop.f32.mrf.mxu1 }
 0x327   :  { %v1057_v45 = vsel %vm1053_vm4, %v600_v43, -inf }
 0x328   :  { %1058 = vmax.xlane.f32.xlu0 %v1057_v45  ;;  %v674_v46 = vpop.f32.mrf.mxu1 }
 0x329   :  { %v675_v54 = vadd.f32 %v674_v46, %v449_v37 }
 0x32a   :  { %v2810_v47 = vpop.f32.mrf.mxu1 }
 0x32b   :  { %v1060_v62 = vsel %vm1053_vm4, %v675_v54, -inf }
 0x32c   :  { %v749_v48 = vpop.f32.mrf.mxu0  ;;  %v824_v49 = vpop.f32.mrf.mxu1 }
 0x32d   :  { %v750_v50 = vadd.f32 %v749_v48, %v449_v37  ;;  %v825_v51 = vadd.f32 %v824_v49, %v449_v37 }
 0x32e   :  { %v2815_v52 = vpop.f32.mrf.mxu0  ;;  %v2820_v53 = vpop.f32.mrf.mxu1 }
 0x32f   :  { %v1066_v55 = vsel %vm1053_vm4, %v825_v51, -inf  ;;  %v1063_v56 = vsel %vm1053_vm4, %v750_v50, -inf }
 0x330   :  { %1067 = vmax.xlane.f32.xlu0 %v1066_v55  ;;  %v974_v57 = vpop.f32.mrf.mxu1  ;;  %1064 = vmax.xlane.f32.xlu1 %v1063_v56  ;;  %v899_v58 = vpop.f32.mrf.mxu0 }
 0x331   :  { %v900_v61 = vadd.f32 %v899_v58, %v449_v37  ;;  %v975_v5 = vadd.f32 %v974_v57, %v449_v37 }
 0x332   :  { %v2825_v59 = vpop.f32.mrf.mxu0  ;;  %v2830_v60 = vpop.f32.mrf.mxu1 }
 0x333   :  { %v1069_v3 = vsel %vm1053_vm4, %v900_v61, -inf  ;;  %v1072_v6 = vsel %vm1053_vm4, %v975_v5, -inf }
 0x334   :  { %1061 = vmax.xlane.f32.xlu1 %v1060_v62  ;;  %v1049_v63 = vpop.f32.mrf.mxu0 }
 0x335   :  { %v1050_v2 = vadd.f32 %v1049_v63, %v449_v37 }
 0x336   :  { %v2835_v1 = vpop.f32.mrf.mxu0 }
 0x337   :  { %v1075_v4 = vsel %vm1053_vm4, %v1050_v2, -inf }
 0x338   :  { %1070 = vmax.xlane.f32.xlu1 %v1069_v3 }
 0x33c   :  { %1076 = vmax.xlane.f32.xlu1 %v1075_v4 }
 0x346   :  { %1166 = vrot.lane.b32.xlu0 %v3137_v12, %s3069_s15 }
 0x34a   :  { %1170 = vrot.lane.b32.xlu0 %v3152_v16, %s3069_s15 }
 0x34d   :  { %1168 = vrot.lane.b32.xlu1 %v3149_v15, %s3069_s15 }
 0x351   :  { %1172 = vrot.lane.b32.xlu1 %v3147_v14, %s3069_s15 }
 0x355   :  { %1176 = vrot.lane.b32.xlu1 %v3158_v18, %s3069_s15 }
 0x359   :  { %1178 = vrot.lane.b32.xlu1 %v3162_v19, %s3069_s15 }
 0x369   :  { %1073 = vmax.xlane.f32.xlu0 %v1072_v6 }
 0x373   :  { %v1056_v8 = vpop.xlane.xlu1 %1055 }
 0x374   :  { %v1078_v10 = vsub.f32 %v525_v39, %v1056_v8 }
 0x376   :  { %v1086_v11 = vmul.f32 1.442695, %v1078_v10 }
 0x378   :  { %2913 = vpow2.f32 %v1086_v11 }
 0x37f   :  { %1174 = vrot.lane.b32.xlu0 %v3156_v17, %s3069_s15 }
 0x385   :  { %v3239_v12 = vpop.eup %2913 }
 0x386   :  { %v1102_v13 = vsel %vm1053_vm4, %v3239_v12, 0.0 }
 0x39e   :  { %1103 = vadd.xlane.f32.xlu0 %v1102_v13 }
 0x3b1   :  { %v1059_v14 = vpop.xlane.xlu0 %1058 }
 0x3b2   :  { %v1079_v15 = vsub.f32 %v600_v43, %v1059_v14 }
 0x3b4   :  { %v1088_v16 = vmul.f32 1.442695, %v1079_v15 }
 0x3b6   :  { %2915 = vpow2.f32 %v1088_v16 }
 0x3b9   :  { %v1068_v18 = vpop.xlane.xlu0 %1067  ;;  %v1065_v19 = vpop.xlane.xlu1 %1064 }
 0x3ba   :  { %v1082_v21 = vsub.f32 %v825_v51, %v1068_v18  ;;  %v1081_v22 = vsub.f32 %v750_v50, %v1065_v19 }
 0x3bc   :  { %v1092_v23 = vmul.f32 1.442695, %v1081_v22  ;;  %v1094_v17 = vmul.f32 1.442695, %v1082_v21 }
 0x3bd   :  { %v1062_v24 = vpop.xlane.xlu1 %1061  ;;  %v1167_v45 = vpop.permute.xlu0 %1166 }
 0x3be   :  { %v1080_v25 = vsub.f32 %v675_v54, %v1062_v24  ;;  %2917 = vpow2.f32 %v1092_v23 }
 0x3bf   :  { %2919 = vpow2.f32 %v1094_v17 }
 0x3c0   :  { %v1090_v26 = vmul.f32 1.442695, %v1080_v25 }
 0x3c1   :  { %v1071_v27 = vpop.xlane.xlu1 %1070  ;;  %v1171_v46 = vpop.permute.xlu0 %1170 }
 0x3c2   :  { %2921 = vpow2.f32 %v1090_v26  ;;  %v1083_v28 = vsub.f32 %v900_v61, %v1071_v27 }
 0x3c3   :  { %v3243_v29 = vpop.eup %2915 }
 0x3c4   :  { %v1096_v30 = vmul.f32 1.442695, %v1083_v28  ;;  %v1105_v31 = vsel %vm1053_vm4, %v3243_v29, 0.0 }
 0x3c5   :  { %1106 = vadd.xlane.f32.xlu1 %v1105_v31  ;;  %v1077_v32 = vpop.xlane.xlu1 %1076 }
 0x3c6   :  { %2923 = vpow2.f32 %v1096_v30  ;;  %v1085_v33 = vsub.f32 %v1050_v2, %v1077_v32 }
 0x3c8   :  { %v1100_v34 = vmul.f32 1.442695, %v1085_v33 }
 0x3c9   :  { %v1169_v52 = vpop.permute.xlu1 %1168 }
 0x3ca   :  { %2925 = vpow2.f32 %v1100_v34 }
 0x3cb   :  { %v3247_v35 = vpop.eup %2917 }
 0x3cc   :  { %v1111_v36 = vsel %vm1053_vm4, %v3247_v35, 0.0  ;;  %v3251_v37 = vpop.eup %2919 }
 0x3cd   :  { %1112 = vadd.xlane.f32.xlu1 %v1111_v36  ;;  %v1114_v40 = vsel %vm1053_vm4, %v3251_v37, 0.0  ;;  %v1173_v53 = vpop.permute.xlu1 %1172 }
 0x3cf   :  { %v3253_v38 = vpop.eup %2921 }
 0x3d0   :  { %v1108_v39 = vsel %vm1053_vm4, %v3253_v38, 0.0 }
 0x3d1   :  { %1109 = vadd.xlane.f32.xlu0 %v1108_v39  ;;  %1115 = vadd.xlane.f32.xlu1 %v1114_v40  ;;  %v1177_v54 = vpop.permute.xlu1 %1176 }
 0x3d3   :  { %v3259_v41 = vpop.eup %2923 }
 0x3d4   :  { %v1117_v42 = vsel %vm1053_vm4, %v3259_v41, 0.0 }
 0x3d5   :  { %1118 = vadd.xlane.f32.xlu0 %v1117_v42  ;;  %v1179_v61 = vpop.permute.xlu1 %1178 }
 0x3d7   :  { %v3263_v43 = vpop.eup %2925 }
 0x3d8   :  { %v1123_v44 = vsel %vm1053_vm4, %v3263_v43, 0.0 }
 0x3d9   :  { %1124 = vadd.xlane.f32.xlu0 %v1123_v44 }
 0x3ef   :  { %1180 = vrot.lane.b32.xlu0 %v3164_v20, %s3069_s15 }
 0x3f2   :  { %v1074_v47 = vpop.xlane.xlu0 %1073 }
 0x3f3   :  { %v1084_v48 = vsub.f32 %v975_v5, %v1074_v47 }
 0x3f5   :  { %v1098_v49 = vmul.f32 1.442695, %v1084_v48 }
 0x3f6   :  { %v1175_v55 = vpop.permute.xlu0 %1174 }
 0x3f7   :  { %2927 = vpow2.f32 %v1098_v49 }
 0x404   :  { %v3269_v50 = vpop.eup %2927 }
 0x405   :  { %v1120_v51 = vsel %vm1053_vm4, %v3269_v50, 0.0 }
 0x406   :  { %1121 = vadd.xlane.f32.xlu1 %v1120_v51 }
 0x40d   :  { %1222 = vxpose.xlu0.b32.start.end [1/1] (short) (narrow) %v1169_v52, 8 }
 0x411   :  { %1254 = vxpose.xlu0.b32.start.end [1/1] (short) (narrow) %v1171_v46, 8 }
 0x415   :  { %1286 = vxpose.xlu0.b32.start.end [1/1] (short) (narrow) %v1173_v53, 8 }
 0x419   :  { %1350 = vxpose.xlu0.b32.start.end [1/1] (short) (narrow) %v1177_v54, 8 }
 0x427   :  { %v1104_v56 = vpop.xlane.xlu0 %1103 }
 0x428   :  { %2929 = vrcp.f32 %v1104_v56 }
 0x435   :  { %v2930_v20 = vpop.eup %2929 }
 0x436   :  { %v1134_v57 = vmul.f32 %v2930_v20, %v1104_v56 }
 0x438   :  { %v1142_v58 = vsub.f32 2.0, %v1134_v57 }
 0x439   :  { %1190 = vxpose.xlu1.b32.start.end [1/1] (short) (narrow) %v1167_v45, 8 }
 0x43a   :  { %v1150_v59 = vmul.f32 %v2930_v20, %v1142_v58 }
 0x43c   :  { %v1158_v60 = vmul.f32 %v3239_v12, %v1150_v59 }
 0x43d   :  { %1318 = vxpose.xlu1.b32.start.end [1/1] (short) (narrow) %v1175_v55, 8 }
 0x43e   :  { %2837 = vmatpush3.xpose.msk.msra.mxu1 %vm1446_vm5, %v1158_v60 }
 0x43f   :  { %2846 = vmatprep.subr.mxu1 %v3059_v0 }
 0x441   :  { %1382 = vxpose.xlu1.b32.start.end [1/1] (short) (narrow) %v1179_v61, 8 }
 0x44e   :  { %v1107_v62 = vpop.xlane.xlu1 %1106 }
 0x44f   :  { %2931 = vrcp.f32 %v1107_v62 }
 0x456   :  { %v1113_v11 = vpop.xlane.xlu1 %1112 }
 0x457   :  { %2933 = vrcp.f32 %v1113_v11 }
 0x45a   :  { %v1110_v63 = vpop.xlane.xlu0 %1109  ;;  %v1116_v32 = vpop.xlane.xlu1 %1115 }
 0x45c   :  { %v2932_v1 = vpop.eup %2931 }
 0x45d   :  { %v1135_v2 = vmul.f32 %v2932_v1, %v1107_v62 }
 0x45e   :  { %v1119_v3 = vpop.xlane.xlu0 %1118 }
 0x45f   :  { %v1143_v4 = vsub.f32 2.0, %v1135_v2  ;;  %2935 = vrcp.f32 %v1119_v3 }
 0x461   :  { %v1151_v5 = vmul.f32 %v2932_v1, %v1143_v4 }
 0x462   :  { %v1125_v6 = vpop.xlane.xlu0 %1124 }
 0x463   :  { %v1159_v8 = vmul.f32 %v3243_v29, %v1151_v5  ;;  %2937 = vrcp.f32 %v1125_v6 }
 0x464   :  { %v2934_v12 = vpop.eup %2933  ;;  %2939 = vrcp.f32 %v1110_v63 }
 0x465   :  { %2842 = vmatpush3.xpose.msk.msra.mxu0 %vm1446_vm5, %v1159_v8  ;;  %v1137_v13 = vmul.f32 %v2934_v12, %v1113_v11  ;;  %2941 = vrcp.f32 %v1116_v32  ;;  %v3070_v8 = vmov 1983009808  }
 0x466   :  { %v1181_v10 = vpop.permute.xlu0 %1180  ;;  %2851 = vmatprep.subr.mxu0 %v3059_v0 }
 0x467   :  { %1414 = vxpose.xlu0.b32.start.end [1/1] (short) (narrow) %v1181_v10, 8  ;;  %v1145_v14 = vsub.f32 2.0, %v1137_v13  ;;  %v2314_v10 = vunpack.c.l.s4 %v3070_v8 }
 0x469   :  { %v1153_v16 = vmul.f32 %v2934_v12, %v1145_v14  ;;  %v2315_v11 = vunpack.c.0.s8 %v2314_v10  ;;  %v3071_v14 = vmov 1934713408  }
 0x46b   :  { %v1161_v21 = vmul.f32 %v3247_v35, %v1153_v16  ;;  %v2318_v16 = vsub.s32 %v2315_v11, %v3131_v7 }
 0x46c   :  { %v2936_v15 = vpop.eup %2935 }
 0x46d   :  { %v1139_v18 = vmul.f32 %v2936_v15, %v1119_v3 }
 0x46f   :  { %v1147_v22 = vsub.f32 2.0, %v1139_v18 }
 0x470   :  { %v2938_v19 = vpop.eup %2937 }
 0x471   :  { %v1141_v23 = vmul.f32 %v2938_v19, %v1125_v6  ;;  %v1155_v24 = vmul.f32 %v2936_v15, %v1147_v22  ;;  %v2940_v34 = vpop.eup %2939  ;;  %v2378_v15 = vunpack.c.l.s4 %v3071_v14 }
 0x472   :  { %v1136_v35 = vmul.f32 %v2940_v34, %v1110_v63  ;;  %v2942_v36 = vpop.eup %2941 }
 0x473   :  { %v1149_v25 = vsub.f32 2.0, %v1141_v23  ;;  %v1163_v27 = vmul.f32 %v3259_v41, %v1155_v24  ;;  %v1138_v40 = vmul.f32 %v2942_v36, %v1116_v32 }
 0x474   :  { %v1144_v39 = vsub.f32 2.0, %v1136_v35 }
 0x475   :  { %v1157_v28 = vmul.f32 %v2938_v19, %v1149_v25 }
 0x476   :  { %v1152_v42 = vmul.f32 %v2940_v34, %v1144_v39 }
 0x477   :  { %v1165_v30 = vmul.f32 %v3263_v43, %v1157_v28  ;;  %v1146_v43 = vsub.f32 2.0, %v1138_v40 }
 0x478   :  { %v1160_v45 = vmul.f32 %v3253_v38, %v1152_v42 }
 0x479   :  { %v1154_v46 = vmul.f32 %v2942_v36, %v1146_v43 }
 0x47b   :  { %v1162_v49 = vmul.f32 %v3251_v37, %v1154_v46 }
 0x489   :  { %v1238_v17 = vpop.trf.xlu0 }
 0x48a   :  { %2844 = vmatmul.mubr.msk.f32.vlgmr.msra.gmra.mxu0 %vm1446_vm5, %v1238_v17 }
 0x48b   :  { %2852 = vmatpush3.xpose.msk.msra.mxu0 %vm1446_vm5, %v1161_v21  ;;  %2853 = vmatprep.mubr.msk.f32.mxu0 %vm3060_vm0, %v3059_v0  ;;  %v2379_v21 = vunpack.c.0.s8 %v2378_v15 }
 0x48c   :  { %2861 = vmatprep.subr.mxu0 %v3059_v0 }
 0x48d   :  { %v1270_v26 = vpop.trf.xlu0  ;;  %v3320_v24 = vsub.s32 %v2379_v21, %v3131_v7 }
 0x48f   :  { %v1122_v33 = vpop.xlane.xlu1 %1121 }
 0x490   :  { %2943 = vrcp.f32 %v1122_v33 }
 0x491   :  { %v1302_v29 = vpop.trf.xlu0 }
 0x492   :  { %2854 = vmatmul.mubr.msk.f32.vlgmr.msra.gmra.mxu0 %vm1446_vm5, %v1302_v29 }
 0x493   :  { %2862 = vmatpush3.xpose.msk.msra.mxu0 %vm1446_vm5, %v1163_v27  ;;  %2863 = vmatprep.mubr.msk.f32.mxu0 %vm3060_vm0, %v3059_v0 }
 0x494   :  { %2871 = vmatprep.subr.mxu0 %v3059_v0 }
 0x495   :  { %v1366_v31 = vpop.trf.xlu0 }
 0x496   :  { %2864 = vmatmul.mubr.msk.f32.vlgmr.msra.gmra.mxu0 %vm1446_vm5, %v1366_v31 }
 0x497   :  { %2872 = vmatpush3.xpose.msk.msra.mxu0 %vm1446_vm5, %v1165_v30  ;;  %2873 = vmatprep.mubr.msk.f32.mxu0 %vm3060_vm0, %v3059_v0 }
 0x49d   :  { %v2944_v41 = vpop.eup %2943 }
 0x49e   :  { %v1140_v44 = vmul.f32 %v2944_v41, %v1122_v33 }
 0x4a0   :  { %v1148_v47 = vsub.f32 2.0, %v1140_v44 }
 0x4a2   :  { %v1156_v51 = vmul.f32 %v2944_v41, %v1148_v47 }
 0x4a4   :  { %v1164_v52 = vmul.f32 %v3269_v50, %v1156_v51 }
 0x4b5   :  { %v1206_v48 = vpop.trf.xlu1 }
 0x4b6   :  { %2839 = vmatmul.mubr.msk.f32.vlgmr.msra.gmra.mxu1 %vm1446_vm5, %v1206_v48 }
 0x4b7   :  { %2847 = vmatpush3.xpose.msk.msra.mxu1 %vm1446_vm5, %v1160_v45  ;;  %2848 = vmatprep.mubr.msk.f32.mxu1 %vm3060_vm0, %v3059_v0 }
 0x4b8   :  { %2856 = vmatprep.subr.mxu1 %v3059_v0 }
 0x4b9   :  { %v1334_v38 = vpop.trf.xlu1 }
 0x4ba   :  { %2849 = vmatmul.mubr.msk.f32.vlgmr.msra.gmra.mxu1 %vm1446_vm5, %v1270_v26 }
 0x4bb   :  { %2857 = vmatpush3.xpose.msk.msra.mxu1 %vm1446_vm5, %v1162_v49  ;;  %2858 = vmatprep.mubr.msk.f32.mxu1 %vm3060_vm0, %v3059_v0 }
 0x4bc   :  { %2866 = vmatprep.subr.mxu1 %v3059_v0 }
 0x4bd   :  { %v1398_v37 = vpop.trf.xlu1 }
 0x4be   :  { %2859 = vmatmul.mubr.msk.f32.vlgmr.msra.gmra.mxu1 %vm1446_vm5, %v1334_v38 }
 0x4bf   :  { %2867 = vmatpush3.xpose.msk.msra.mxu1 %vm1446_vm5, %v1164_v52  ;;  %2868 = vmatprep.mubr.msk.f32.mxu1 %vm3060_vm0, %v3059_v0 }
 0x4c0   :  { %2876 = vmatprep.subr.mxu1 %v3059_v0 }
 0x4c2   :  { %2869 = vmatmul.mubr.msk.f32.vlgmr.msra.gmra.mxu1 %vm1446_vm5, %v1398_v37 }
 0x4c3   :  { %2884 = vmatprep.mubr.msk.f32.mxu1 %vm3060_vm0, %v3059_v0 }
 0x4e3   :  { %v1430_v53 = vpop.trf.xlu0 }
 0x4e4   :  { %2874 = vmatmul.mubr.msk.f32.vlgmr.msra.gmra.mxu0 %vm1446_vm5, %v1430_v53 }
 0x54a   :  { %v1595_v54 = vpop.f32.mrf.mxu0 }
 0x54b   :  { %2087 = vxpose.xlu0.b32.start.end [1/1] (short) (narrow) %v1595_v54, 8 }
 0x54c   :  { %v2845_v50 = vpop.f32.mrf.mxu0 }
 0x552   :  { %v1747_v55 = vpop.f32.mrf.mxu0 }
 0x553   :  { %2151 = vxpose.xlu0.b32.start.end [1/1] (short) (narrow) %v1747_v55, 8 }
 0x554   :  { %v2855_v56 = vpop.f32.mrf.mxu0 }
 0x556   :  { %v1899_v20 = vpop.f32.mrf.mxu0 }
 0x557   :  { %2215 = vxpose.xlu0.b32.start.end [1/1] (short) (narrow) %v1899_v20, 8 }
 0x558   :  { %v2865_v57 = vpop.f32.mrf.mxu0 }
 0x576   :  { %v1519_v58 = vpop.f32.mrf.mxu1 }
 0x577   :  { %2055 = vxpose.xlu1.b32.start.end [1/1] (short) (narrow) %v1519_v58, 8 }
 0x578   :  { %v2840_v59 = vpop.f32.mrf.mxu1 }
 0x57a   :  { %v1671_v60 = vpop.f32.mrf.mxu1 }
 0x57b   :  { %2119 = vxpose.xlu1.b32.start.end [1/1] (short) (narrow) %v1671_v60, 8 }
 0x57c   :  { %v2850_v61 = vpop.f32.mrf.mxu1 }
 0x57e   :  { %v1823_v62 = vpop.f32.mrf.mxu1 }
 0x57f   :  { %2183 = vxpose.xlu1.b32.start.end [1/1] (short) (narrow) %v1823_v62, 8 }
 0x580   :  { %v2860_v63 = vpop.f32.mrf.mxu1 }
 0x582   :  { %v1975_v1 = vpop.f32.mrf.mxu1 }
 0x583   :  { %2247 = vxpose.xlu1.b32.start.end [1/1] (short) (narrow) %v1975_v1, 8 }
 0x584   :  { %v2870_v2 = vpop.f32.mrf.mxu1 }
 0x5a4   :  { %v2051_v3 = vpop.f32.mrf.mxu0 }
 0x5a5   :  { %2279 = vxpose.xlu0.b32.start.end [1/1] (short) (narrow) %v2051_v3, 8 }
 0x5a6   :  { %v2875_v4 = vpop.f32.mrf.mxu0 }
 0x5c7   :  { %v2103_v6 = vpop.trf.xlu0 }
 0x5cf   :  { %v2167_v13 = vpop.trf.xlu0 }
 0x5d0   :  { %v2327_v19 = vcombine.low %v2103_v6, %v2167_v13  ;;  %v2328_v26 = vcombine.high %v2103_v6, %v2167_v13 }
 0x5d2   :  { %v2335_v23 = vrot.slane %v2327_v19, %v2318_v16  ;;  %v2342_v32 = vrot.slane %v2328_v26, %v2318_v16 }
 0x5d3   :  { %v2231_v29 = vpop.trf.xlu0 }
 0x5f3   :  { %v2071_v5 = vpop.trf.xlu1 }
 0x5f7   :  { %v2135_v12 = vpop.trf.xlu1 }
 0x5f8   :  { %v2311_v18 = vcombine.low %v2071_v5, %v2135_v12  ;;  %v2312_v25 = vcombine.high %v2071_v5, %v2135_v12  ;;  %v2607_v12 = vld [vmem:[#allocation7 + $0x18] sm:$0xff] }
 0x5f9   :  { %2877 = vmatpush3.msra.mxu1 %v2607_v12 }
 0x5fa   :  { %v2319_v22 = vrot.slane %v2311_v18, %v2318_v16  ;;  %v2326_v31 = vrot.slane %v2312_v25, %v2318_v16  ;;  %2878 = vmatprep.subr.mxu1 %v3059_v0 }
 0x5fb   :  { %v2199_v17 = vpop.trf.xlu1 }
 0x5fc   :  { %v2375_v27 = vcombine.low %v2319_v22, %v2335_v23  ;;  %v2376_v28 = vcombine.high %v2319_v22, %v2335_v23  ;;  %v2391_v42 = vcombine.low %v2326_v31, %v2342_v32  ;;  %v2604_v31 = vld [vmem:[#allocation7] sm:$0xff] }
 0x5fe   :  { %v2383_v33 = vrot.slane %v2375_v27, %v3320_v24  ;;  %v2390_v34 = vrot.slane %v2376_v28, %v3320_v24  ;;  %v2398_v53 = vrot.slane %v2391_v42, %v3320_v24  ;;  %v2605_v27 = vld [vmem:[#allocation7 + $0x8] sm:$0xff] }
 0x5ff   :  { %v2263_v30 = vpop.trf.xlu1 }
 0x600   :  { %v2343_v35 = vcombine.low %v2199_v17, %v2263_v30  ;;  %v2344_v36 = vcombine.high %v2199_v17, %v2263_v30  ;;  %v2737_v43 = vcombine.low %v2383_v33, %v2390_v34  ;;  %v2739_v44 = vcombine.high %v2383_v33, %v2390_v34  ;;  %v2606_v17 = vld [vmem:[#allocation7 + $0x10] sm:$0xff] }
 0x601   :  { %2879 = vmatpush3.msra.mxu1 %v2606_v17 }
 0x602   :  { %v2351_v45 = vrot.slane %v2343_v35, %v2318_v16  ;;  %v2358_v46 = vrot.slane %v2344_v36, %v2318_v16  ;;  %v2437_v52 = vrot.slane %v2737_v43, %v2318_v16  ;;  %v2453_v37 = vrot.slane %v2739_v44, %v2318_v16  ;;  %2880 = vmatprep.subr.mxu1 %v3059_v0 }
 0x603   :  { %2881 = vmatpush3.msra.mxu1 %v2605_v27 }
 0x604   :  { %v2492_v59 = vcombine.high %v2437_v52, %v2453_v37  ;;  %v2491_v60 = vcombine.low %v2437_v52, %v2453_v37  ;;  %2882 = vmatprep.subr.mxu1 %v3059_v0 }
 0x605   :  { %2883 = vmatpush3.msra.mxu1 %v2604_v31 }
 0x606   :  { %v2506_v10 = vrot.slane %v2492_v59, %v3320_v24  ;;  %v2499_v11 = vrot.slane %v2491_v60, %v3320_v24 }
 0x621   :  { %v2295_v39 = vpop.trf.xlu0 }
 0x622   :  { %v2359_v40 = vcombine.low %v2231_v29, %v2295_v39  ;;  %v2360_v41 = vcombine.high %v2231_v29, %v2295_v39 }
 0x624   :  { %v2367_v47 = vrot.slane %v2359_v40, %v2318_v16  ;;  %v2374_v48 = vrot.slane %v2360_v41, %v2318_v16 }
 0x626   :  { %v2399_v49 = vcombine.low %v2351_v45, %v2367_v47  ;;  %v2400_v51 = vcombine.high %v2351_v45, %v2367_v47  ;;  %v2415_v38 = vcombine.low %v2358_v46, %v2374_v48 }
 0x628   :  { %v2407_v54 = vrot.slane %v2399_v49, %v3320_v24  ;;  %v2414_v50 = vrot.slane %v2400_v51, %v3320_v24  ;;  %v2422_v55 = vrot.slane %v2415_v38, %v3320_v24  ;;  %v2610_v51 = vsub.s32 1, %v3131_v7 }
 0x62a   :  { %v2738_v56 = vcombine.low %v2407_v54, %v2414_v50  ;;  %v2740_v20 = vcombine.high %v2407_v54, %v2414_v50  ;;  %v2427_v57 = vcombine.low %v2398_v53, %v2422_v55  ;;  %v2428_v58 = vcombine.high %v2398_v53, %v2422_v55 }
 0x62b   :  { %v2741_v61 = vcombine.high %v2422_v55, %v3059_v0  ;;  %v2611_v38 = vrot.slane %v3134_v9, %v2610_v51 }
 0x62c   :  { %v2468_v62 = vrot.slane %v2427_v57, %v2318_v16  ;;  %v2483_v63 = vrot.slane %v2428_v58, %v2318_v16  ;;  %v2461_v1 = vcombine.high %v2427_v57, %v3059_v0  ;;  %v2444_v2 = vrot.slane %v2738_v56, %v2318_v16 }
 0x62d   :  { %v2460_v3 = vrot.slane %v2740_v20, %v2318_v16  ;;  %v2490_v8 = vrot.slane %v2741_v61, %v2318_v16 }
 0x62e   :  { %v2524_v4 = vcombine.high %v2468_v62, %v2483_v63  ;;  %v2523_v5 = vcombine.low %v2468_v62, %v2483_v63  ;;  %v2475_v6 = vrot.slane %v2461_v1, %v2318_v16 }
 0x62f   :  { %v2508_v15 = vcombine.high %v2444_v2, %v2460_v3  ;;  %v2507_v26 = vcombine.low %v2444_v2, %v2460_v3 }
 0x630   :  { %v2538_v13 = vrot.slane %v2524_v4, %v3320_v24  ;;  %v2531_v14 = vrot.slane %v2523_v5, %v3320_v24  ;;  %v2540_v18 = vcombine.high %v2475_v6, %v2490_v8  ;;  %v2539_v23 = vcombine.low %v2475_v6, %v2490_v8 }
 0x631   :  { %v2522_v25 = vrot.slane %v2508_v15, %v3320_v24  ;;  %v2515_v32 = vrot.slane %v2507_v26, %v3320_v24 }
 0x632   :  { %v2557_v19 = vcombine.low %v2506_v10, %v2538_v13  ;;  %v2556_v21 = vcombine.high %v2499_v11, %v2531_v14  ;;  %v2554_v22 = vrot.slane %v2540_v18, %v3320_v24  ;;  %v2555_v16 = vcombine.low %v2499_v11, %v2531_v14 }
 0x633   :  { %v2558_v28 = vcombine.high %v2506_v10, %v2538_v13  ;;  %v2547_v30 = vrot.slane %v2539_v23, %v3320_v24 }
 0x634   :  { %2568 = vrot.lane.b32.xlu0 %v2557_v19, %s3055_s19  ;;  %2564 = vrot.lane.b32.xlu1 %v2556_v21, %s3072_s16  ;;  %v2561_v29 = vcombine.low %v2522_v25, %v2554_v22  ;;  %s3075_s19 = smov 16   ;;  %v2562_v35 = vcombine.high %v2522_v25, %v2554_v22 }
 0x635   :  { %v2559_v33 = vcombine.low %v2515_v32, %v2547_v30  ;;  %v2560_v34 = vcombine.high %v2515_v32, %v2547_v30 }
 0x638   :  { %2572 = vrot.lane.b32.xlu1 %v2558_v28, %s3073_s17  ;;  %2584 = vrot.lane.b32.xlu0 %v2561_v29, %s3074_s18 }
 0x63c   :  { %2576 = vrot.lane.b32.xlu1 %v2559_v33, %s3075_s19 }
 0x640   :  { %2580 = vrot.lane.b32.xlu1 %v2560_v34, %s3076_s20 }
 0x644   :  { %2588 = vrot.lane.b32.xlu1 %v2562_v35, %s3077_s21 }
 0x6a6   :  { %v2565_v36 = vpop.permute.xlu1 %2564  ;;  %v2569_v40 = vpop.permute.xlu0 %2568 }
 0x6a7   :  { %v2591_v41 = vsel %vm451_vm3, %v2555_v16, %v2565_v36 }
 0x6a8   :  { %v2593_v0 = vsel %vm2592_vm6, %v2591_v41, %v2569_v40 }
 0x6aa   :  { %v2573_v39 = vpop.permute.xlu1 %2572  ;;  %v2585_v46 = vpop.permute.xlu0 %2584 }
 0x6ab   :  { %v2595_v42 = vsel %vm2594_vm7, %v2593_v0, %v2573_v39 }
 0x6ae   :  { %v2577_v24 = vpop.permute.xlu1 %2576 }
 0x6af   :  { %v2597_v43 = vsel %vm2596_vm8, %v2595_v42, %v2577_v24 }
 0x6b2   :  { %v2581_v44 = vpop.permute.xlu1 %2580 }
 0x6b3   :  { %v2599_v45 = vsel %vm2598_vm9, %v2597_v43, %v2581_v44 }
 0x6b4   :  { %v2601_v47 = vsel %vm2600_vm10, %v2599_v45, %v2585_v46 }
 0x6b6   :  { %v2589_v48 = vpop.permute.xlu1 %2588 }
 0x6b7   :  { %v2603_v49 = vsel %vm2602_vm11, %v2601_v47, %v2589_v48 }
 0x6b8   :  { %2885 = vmatmul.mubr.msk.f32.vlgmr.msra.gmra.mxu1 %vm79_vm1, %v2603_v49 }
 0x778   :  { %v2681_v52 = vpop.f32.mrf.mxu1 }
 0x779   :  { %v2682_v37 = vadd.f32 %v2681_v52, %v2611_v38 }
 0x77a   :  { %v2886_v53 = vpop.f32.mrf.mxu1 }
 0x77b   :  { %2686 = vst.msk [vmem:[#allocation10] sm:$0x3f] %vm2685_vm12, %v2682_v37 }
 0x77c   :  { %3036 = shalt.err (!%p3033_p10)
}
 0x77d   :  { %2696 = dma.vmem_to_hbm [thread:$0]  %s2694_s23, 128, %s3353_s4, [#allocation4]  }
 0x77e   :  { %3051 = dma.done.wait [#allocation4], 128  }
 0x77f   :  { %3052 = vsyncadd [#allocation4], 4294967168 }
 0x780   :  { %2700 = vsyncpa [#allocation3], 1 }
 0x781   :  { %2701 = vsyncpa [#allocation6], 1 }
 0x782   :  { %2702 = vsyncpa [#allocation9], 1 }
 0x783   :  { %2703 = vsyncpa [#allocation4], 1 }

</bundles_post_ra>
